<compile_context>
chip_gen: v7x
topology: tpu7x:2x2x1
jax: 0.10.0
libtpu: 0.0.40
codegen_flags: <defaults>
</compile_context>

<pallas_src>
import functools

import jax
import jax.numpy as jnp
from jax.experimental import pallas as pl
from jax.experimental.pallas import tpu as pltpu


def _round_up(n: int, m: int) -> int:
    return ((n + m - 1) // m) * m


def _use_bf16_act() -> bool:
    """bf16 tanh only where the EUP/VPU support it (v6e / v7x)."""
    try:
        kind = jax.devices()[0].device_kind.lower()
    except Exception:  # unknown backend -> safe f32 path
        return False
    return ("v6" in kind) or ("v7" in kind)


def _mlp_kernel(x_ref, w1_ref, b1_ref, w2_ref, b2_ref, w3t_ref, b3_ref, o_ref,
                *, bf16_act: bool):
    """Fused 3-layer MLP on one batch tile, emitting a lane-dense (1, TB) row.

    Layers 1/2: bf16 MXU matmuls with f32 accumulation, bias add in f32.
    tanh runs in bf16 on v6e/v7x (bf16 EUP), f32 on v5e.
    Layer 3 (out_features == 1): contraction over H2 with h2 as the RHS so the
    result is already the (1, TB) lane-dense output row; bias fused.
    """
    # layer 1: (TB, D) @ (D, H1) -> (TB, H1), f32 acc (x cast to bf16 in-kernel)
    h1 = jnp.dot(x_ref[...].astype(jnp.bfloat16), w1_ref[...],
                 preferred_element_type=jnp.float32)
    h1 = h1 + b1_ref[...]
    if bf16_act:
        h1 = jnp.tanh(h1.astype(jnp.bfloat16))          # bf16 EUP, feeds MXU directly
    else:
        h1 = jnp.tanh(h1).astype(jnp.bfloat16)          # f32 EUP (v5e), cast for MXU

    # layer 2: (TB, H1) @ (H1, H2) -> (TB, H2), f32 acc
    h2 = jnp.dot(h1, w2_ref[...], preferred_element_type=jnp.float32)
    h2 = h2 + b2_ref[...]
    if bf16_act:
        h2 = jnp.tanh(h2.astype(jnp.bfloat16)).astype(jnp.float32)
    else:
        h2 = jnp.tanh(h2)

    # layer 3 (N=1): (1, H2) · (TB, H2)^T -> (1, TB) lane-dense row; bias fused.
    row = jax.lax.dot_general(
        w3t_ref[...], h2,
        dimension_numbers=(((1,), (1,)), ((), ())),
        preferred_element_type=jnp.float32)
    o_ref[...] = (row + b3_ref[...]).astype(o_ref.dtype)


def prepare_params(params):
    """One-time (outside the per-call path) weight prep: bf16 MXU weights, w3^T."""
    w1, b1, w2, b2, w3, b3 = params
    return (w1.astype(jnp.bfloat16), b1,
            w2.astype(jnp.bfloat16), b2,
            w3.T,                                   # (1, H2) f32 lane row
            b3)


@functools.partial(jax.jit, static_argnames=("tb_cap",))
def baseline_network_forward(x, prepped_params, tb_cap=2048):
    """Pallas forward pass. x: (B, D) float32 -> returns (B-1,) float32."""
    w1, b1, w2, b2, w3t, b3 = prepped_params
    B, D = x.shape
    H1 = w1.shape[1]
    H2 = w2.shape[1]
    bf16_act = _use_bf16_act()

    # Batch tile: multiple of 8 (sublane rule).  Big cap so the grid loop isn't
    # pure per-step overhead; ragged tail handled by a partial last block.
    TB = min(tb_cap, _round_up(B, 8))
    num_tiles = pl.cdiv(B, TB)
    if num_tiles > 1:
        # lane-dense output blocks need TB % 128 == 0 when tiled along lanes
        assert TB % 128 == 0, (TB, B)
    out_cols = num_tiles * TB

    cost = pl.CostEstimate(
        flops=2 * B * (D * H1 + H1 * H2 + H2),
        transcendentals=B * (H1 + H2),
        bytes_accessed=(B * D * 4                      # x (f32, read directly)
                        + (D * H1 + H1 * H2) * 2       # W1, W2 (bf16)
                        + (H1 + H2 + H2 + 1) * 4       # b1, b2, w3^T, b3 (f32)
                        + out_cols * 4),               # lane-dense output row
    )

    mlp_rows = pl.pallas_call(
        functools.partial(_mlp_kernel, bf16_act=bf16_act),
        out_shape=jax.ShapeDtypeStruct((1, out_cols), jnp.float32),
        grid=(num_tiles,),
        in_specs=[
            pl.BlockSpec((TB, D), lambda i: (i, 0)),      # x tile (f32, pipelined)
            pl.BlockSpec((D, H1), lambda i: (0, 0)),      # W1 (bf16, resident)
            pl.BlockSpec((1, H1), lambda i: (0, 0)),      # b1
            pl.BlockSpec((H1, H2), lambda i: (0, 0)),     # W2 (bf16, resident)
            pl.BlockSpec((1, H2), lambda i: (0, 0)),      # b2
            pl.BlockSpec((1, H2), lambda i: (0, 0)),      # w3^T (f32 lane row)
            pl.BlockSpec((1, 1), lambda i: (0, 0)),       # b3
        ],
        out_specs=pl.BlockSpec((1, TB), lambda i: (0, i)),  # lane-dense row per step
        compiler_params=pltpu.CompilerParams(
            dimension_semantics=("parallel",),            # megacore sharding on v7x
        ),
        cost_estimate=cost,
    )(x, w1, b1, w2, b2, w3t, b3)

    # glue: keep only the valid columns, then .squeeze(-1)[:-1]
    return mlp_rows[0, :B][:-1]


def init_params(key, input_size, network_shape):
    """Deterministic synthetic parameter init (mirrors MLP layer shapes)."""
    h1, h2 = network_shape
    keys = jax.random.split(key, 6)
    w1 = jax.random.normal(keys[0], (input_size, h1), jnp.float32) * 0.1
    b1 = jax.random.normal(keys[1], (1, h1), jnp.float32) * 0.01
    w2 = jax.random.normal(keys[2], (h1, h2), jnp.float32) * 0.1
    b2 = jax.random.normal(keys[3], (1, h2), jnp.float32) * 0.01
    w3 = jax.random.normal(keys[4], (h2, 1), jnp.float32) * 0.1
    b3 = jax.random.normal(keys[5], (1, 1), jnp.float32) * 0.01
    return (w1, b1, w2, b2, w3, b3)


def _reference_forward(x, params, bf16_act):
    """Pure-JAX reference matching the kernel's dtype convention."""
    w1, b1, w2, b2, w3, b3 = params
    f32 = jnp.float32
    rb = lambda a: a.astype(jnp.bfloat16).astype(f32)   # round-trip through bf16

    h = jnp.dot(rb(x), rb(w1)) + b1
    h = jnp.tanh(rb(h)) if bf16_act else jnp.tanh(h)
    h = rb(h)                                            # layer-2 MXU input is bf16
    h = jnp.dot(h, rb(w2)) + b2
    h = rb(jnp.tanh(rb(h))) if bf16_act else jnp.tanh(h)
    out = jnp.dot(h, w3) + b3
    return out.squeeze(-1)[:-1]


if __name__ == "__main__":
    # Shapes consistent with the module: input_size=16, network_shape=[32, 32],
    # output_size=1.  Batches: aligned (8), ragged (11), and a multi-tile case
    # (B=300 with tb_cap=128 -> 3 grid steps, ragged last block) to exercise
    # the pipelined / partial-block path.
    D = 16
    network_shape = [32, 32]

    key = jax.random.PRNGKey(0)
    kx, kp = jax.random.split(key)
    params = init_params(kp, D, network_shape)
    prepped = prepare_params(params)
    bf16_act = _use_bf16_act()

    for B, cap in ((8, 2048), (11, 2048), (300, 128)):
        x = jax.random.normal(jax.random.fold_in(kx, B), (B, D), jnp.float32)
        out = baseline_network_forward(x, prepped, tb_cap=cap)
        out = jax.block_until_ready(out)

        ref = _reference_forward(x, params, bf16_act)
        assert out.shape == (B - 1,), out.shape
        assert jnp.allclose(out, ref, atol=1e-2, rtol=1e-2), float(
            jnp.max(jnp.abs(out - ref)))

    # TODO(synk): `self.transform` is None in this synthetic setup; a user-provided
    # transform callable would be applied to x before the kernel.
    print("KERNEL_OK")
</pallas_src>

<mosaic_0001>
module attributes {stable_mosaic.version = 11 : i64} {
  func.func @_mlp_kernel(%arg0: i32, %arg1: memref<8x16xf32, #tpu.memory_space<vmem>>, %arg2: memref<16x32xbf16, #tpu.memory_space<vmem>>, %arg3: memref<1x32xf32, #tpu.memory_space<vmem>>, %arg4: memref<32x32xbf16, #tpu.memory_space<vmem>>, %arg5: memref<1x32xf32, #tpu.memory_space<vmem>>, %arg6: memref<1x32xf32, #tpu.memory_space<vmem>>, %arg7: memref<1x1xf32, #tpu.memory_space<vmem>>, %arg8: memref<1x8xf32, #tpu.memory_space<vmem>>) attributes {dimension_semantics = [#tpu.dimension_semantics<parallel>], iteration_bounds = array<i64: 1>, scalar_prefetch = 0 : i64, scratch_operands = 0 : i64, tpu.core_type = #tpu.core_type<tc>, window_params = [{transform_indices = @transform_0, window_bounds = array<i64: 8, 16>}, {pipeline_mode = #tpu.pipeline_mode<synchronous>, transform_indices = @transform_1, window_bounds = array<i64: 16, 32>}, {pipeline_mode = #tpu.pipeline_mode<synchronous>, transform_indices = @transform_2, window_bounds = array<i64: 1, 32>}, {pipeline_mode = #tpu.pipeline_mode<synchronous>, transform_indices = @transform_3, window_bounds = array<i64: 32, 32>}, {pipeline_mode = #tpu.pipeline_mode<synchronous>, transform_indices = @transform_4, window_bounds = array<i64: 1, 32>}, {pipeline_mode = #tpu.pipeline_mode<synchronous>, transform_indices = @transform_5, window_bounds = array<i64: 1, 32>}, {pipeline_mode = #tpu.pipeline_mode<synchronous>, transform_indices = @transform_6, window_bounds = array<i64: 1, 1>}, {transform_indices = @transform_7, window_bounds = array<i64: 1, 8>}]} {
    %c0 = arith.constant 0 : index
    %c0_0 = arith.constant 0 : index
    %0 = vector.load %arg1[%c0, %c0_0] : memref<8x16xf32, #tpu.memory_space<vmem>>, vector<8x16xf32>
    %1 = arith.truncf %0 : vector<8x16xf32> to vector<8x16xbf16>
    %c0_1 = arith.constant 0 : index
    %c0_2 = arith.constant 0 : index
    %2 = vector.load %arg2[%c0_1, %c0_2] : memref<16x32xbf16, #tpu.memory_space<vmem>>, vector<16x32xbf16>
    %cst = arith.constant dense<0.000000e+00> : vector<8x32xf32>
    %3 = tpu.matmul %1, %2, %cst {dimension_numbers = #tpu.dot_dimension_numbers<[1], [0], [0], [1], [0, 0, 1, 1], [], []>} : vector<8x16xbf16>, vector<16x32xbf16>, vector<8x32xf32> -> vector<8x32xf32>
    %c0_3 = arith.constant 0 : index
    %c0_4 = arith.constant 0 : index
    %4 = vector.load %arg3[%c0_3, %c0_4] : memref<1x32xf32, #tpu.memory_space<vmem>>, vector<1x32xf32>
    %5 = vector.broadcast %4 : vector<1x32xf32> to vector<8x32xf32>
    %6 = arith.addf %3, %5 : vector<8x32xf32>
    %7 = math.tanh %6 : vector<8x32xf32>
    %8 = arith.truncf %7 : vector<8x32xf32> to vector<8x32xbf16>
    %c0_5 = arith.constant 0 : index
    %c0_6 = arith.constant 0 : index
    %9 = vector.load %arg4[%c0_5, %c0_6] : memref<32x32xbf16, #tpu.memory_space<vmem>>, vector<32x32xbf16>
    %cst_7 = arith.constant dense<0.000000e+00> : vector<8x32xf32>
    %10 = tpu.matmul %8, %9, %cst_7 {dimension_numbers = #tpu.dot_dimension_numbers<[1], [0], [0], [1], [0, 0, 1, 1], [], []>} : vector<8x32xbf16>, vector<32x32xbf16>, vector<8x32xf32> -> vector<8x32xf32>
    %c0_8 = arith.constant 0 : index
    %c0_9 = arith.constant 0 : index
    %11 = vector.load %arg5[%c0_8, %c0_9] : memref<1x32xf32, #tpu.memory_space<vmem>>, vector<1x32xf32>
    %12 = vector.broadcast %11 : vector<1x32xf32> to vector<8x32xf32>
    %13 = arith.addf %10, %12 : vector<8x32xf32>
    %14 = math.tanh %13 : vector<8x32xf32>
    %c0_10 = arith.constant 0 : index
    %c0_11 = arith.constant 0 : index
    %15 = vector.load %arg6[%c0_10, %c0_11] : memref<1x32xf32, #tpu.memory_space<vmem>>, vector<1x32xf32>
    %cst_12 = arith.constant dense<0.000000e+00> : vector<1x8xf32>
    %16 = tpu.matmul %15, %14, %cst_12 {dimension_numbers = #tpu.dot_dimension_numbers<[1], [1], [0], [0], [0, 0, 1, 0], [], []>} : vector<1x32xf32>, vector<8x32xf32>, vector<1x8xf32> -> vector<1x8xf32>
    %c0_13 = arith.constant 0 : index
    %c0_14 = arith.constant 0 : index
    %17 = vector.load %arg7[%c0_13, %c0_14] : memref<1x1xf32, #tpu.memory_space<vmem>>, vector<1x1xf32>
    %18 = vector.broadcast %17 : vector<1x1xf32> to vector<1x8xf32>
    %19 = arith.addf %16, %18 : vector<1x8xf32>
    %c0_15 = arith.constant 0 : index
    %c0_16 = arith.constant 0 : index
    %20 = vector.load %arg8[%c0_15, %c0_16] : memref<1x8xf32, #tpu.memory_space<vmem>>, vector<1x8xf32>
    tpu.vector_store %arg8[%c0_15, %c0_16], %19 {strides = array<i32>} : memref<1x8xf32, #tpu.memory_space<vmem>>, vector<1x8xf32>,
    return
  }
  func.func @transform_0(%arg0: i32) -> (i32, i32) {
    %c0_i32 = arith.constant 0 : i32
    %c0_i32_0 = arith.constant 0 : i32
    return %arg0, %c0_i32 : i32, i32
  }
  func.func @transform_1(%arg0: i32) -> (i32, i32) {
    %c0_i32 = arith.constant 0 : i32
    %c0_i32_0 = arith.constant 0 : i32
    %c0_i32_1 = arith.constant 0 : i32
    return %c0_i32, %c0_i32_0 : i32, i32
  }
  func.func @transform_2(%arg0: i32) -> (i32, i32) {
    %c0_i32 = arith.constant 0 : i32
    %c0_i32_0 = arith.constant 0 : i32
    %c0_i32_1 = arith.constant 0 : i32
    return %c0_i32, %c0_i32_0 : i32, i32
  }
  func.func @transform_3(%arg0: i32) -> (i32, i32) {
    %c0_i32 = arith.constant 0 : i32
    %c0_i32_0 = arith.constant 0 : i32
    %c0_i32_1 = arith.constant 0 : i32
    return %c0_i32, %c0_i32_0 : i32, i32
  }
  func.func @transform_4(%arg0: i32) -> (i32, i32) {
    %c0_i32 = arith.constant 0 : i32
    %c0_i32_0 = arith.constant 0 : i32
    %c0_i32_1 = arith.constant 0 : i32
    return %c0_i32, %c0_i32_0 : i32, i32
  }
  func.func @transform_5(%arg0: i32) -> (i32, i32) {
    %c0_i32 = arith.constant 0 : i32
    %c0_i32_0 = arith.constant 0 : i32
    %c0_i32_1 = arith.constant 0 : i32
    return %c0_i32, %c0_i32_0 : i32, i32
  }
  func.func @transform_6(%arg0: i32) -> (i32, i32) {
    %c0_i32 = arith.constant 0 : i32
    %c0_i32_0 = arith.constant 0 : i32
    %c0_i32_1 = arith.constant 0 : i32
    return %c0_i32, %c0_i32_0 : i32, i32
  }
  func.func @transform_7(%arg0: i32) -> (i32, i32) {
    %c0_i32 = arith.constant 0 : i32
    %c0_i32_0 = arith.constant 0 : i32
    return %c0_i32, %arg0 : i32, i32
  }
}

</mosaic_0001>

<bundles_post_ra>
// kernel: baseline_network_forward.1
= control target key start
LH: loop header
LB: loop body
LE: loop exit
PB: predicated region body
PF: predicated region fallthrough
CT: control target
= control target key end

     0   :  { %s523_s0 = inlined_call_operand.hbm [shape: f32[8,16], index: 0, kind: input, shape index: {}]   ;;  %s524_s1 = inlined_call_operand.hbm [shape: bf16[16,32], index: 1, kind: input, shape index: {}]   ;;  %s525_s2 = inlined_call_operand.vmem [shape: f32[1,32], index: 2, kind: input, shape index: {}]   ;;  %s526_s3 = inlined_call_operand.hbm [shape: bf16[32,32], index: 3, kind: input, shape index: {}]   ;;  %s527_s4 = inlined_call_operand.vmem [shape: f32[1,32], index: 4, kind: input, shape index: {}]   ;;  %s528_s5 = inlined_call_operand.vmem [shape: f32[1,32], index: 5, kind: input, shape index: {}]   ;;  %s529_s6 = inlined_call_operand.<no memory space> [shape: f32[1,1], index: 6, kind: input, shape index: {}]   ;;  %s530_s7 = inlined_call_operand.vmem [shape: f32[1,8], index: 7, kind: output, shape index: {}]  }
   0x1   :  { %v12_v0 = vstv %s529_s6 }
   0x2   :  { %13 = vst [vmem:[#allocation2] sm:$0x1] %v12_v0 }
   0x3   :  { %14 = vsyncpa [#allocation4], 0 }
   0x4   :  { %15 = vsyncpa [#allocation6], 0  ;;  %s415_s26 = smov [#allocation5]   ;;  %s345_s30 = scalar_lea.hbm %s524_s1, 128 }
   0x5   :  { %s31_s27 = sshll.u32 %s415_s26, 4  ;;  %p346_p0 = scmp.ne.s32.totalorder %s524_s1, %s345_s30  ;;  %s32_s27 = int_to_ptr.vmem [resolvable:$true] %s31_s27 }
   0x6   :  { %p349_p1 = scmp.lt.u32.totalorder %s345_s30, %s524_s1 }
   0x8   :  { %p351_p2 = pnand %p349_p1, %p346_p0 }
   0xa   :  { %354 = shalt.err (!%p351_p2)
}
   0xb   :  { %s355_s6 = scalar_lea.vmem %s32_s27, 128  ;;  %p360_p4 = scmp.lt.s32.totalorder %s32_s27, %s32_s27 }
   0xc   :  { %p356_p3 = scmp.ne.s32.totalorder %s32_s27, %s355_s6  ;;  %p361_p5 = scmp.lt.s32.totalorder %s355_s6, %s355_s6 }
   0xe   :  { %p362_p6 = por %p361_p5, %p360_p4 }
  0x10   :  { %p363_p7 = pnand %p362_p6, %p356_p3 }
  0x12   :  { %366 = shalt.err (!%p363_p7)
}
  0x13   :  { %s416_s12 = smov 64   ;;  %s417_s13 = smov 4  }
  0x14   :  { %37 = dma.hbm_to_vmem [thread:$0]  %s524_s1, 128, %s32_s27, [#allocation6], %s416_s12, %s416_s12, %s417_s13  }
  0x15   :  { %s418_s16 = smov [#allocation3]   ;;  %s419_s18 = smov [#allocation7]  }
  0x16   :  { %s22_s17 = sshll.u32 %s418_s16, 4  ;;  %s45_s19 = sshll.u32 %s419_s18, 4  ;;  %s23_s17 = int_to_ptr.vmem [resolvable:$true] %s22_s17  ;;  %s46_s19 = int_to_ptr.vmem [resolvable:$true] %s45_s19 }
  0x17   :  { %s367_s22 = scalar_lea.hbm %s523_s0, 128 }
  0x18   :  { %p368_p8 = scmp.ne.s32.totalorder %s523_s0, %s367_s22  ;;  %p371_p9 = scmp.lt.u32.totalorder %s367_s22, %s523_s0 }
  0x1a   :  { %p373_p10 = pnand %p371_p9, %p368_p8 }
  0x1c   :  { %376 = shalt.err (!%p373_p10)
}
  0x1d   :  { %s377_s1 = scalar_lea.vmem %s23_s17, 128  ;;  %p382_p12 = scmp.lt.s32.totalorder %s23_s17, %s23_s17 }
  0x1e   :  { %p378_p11 = scmp.ne.s32.totalorder %s23_s17, %s377_s1  ;;  %p383_p13 = scmp.lt.s32.totalorder %s377_s1, %s377_s1 }
  0x20   :  { %p384_p0 = por %p383_p13, %p382_p12 }
  0x22   :  { %p385_p1 = pnand %p384_p0, %p378_p11 }
  0x24   :  { %388 = shalt.err (!%p385_p1)
}
  0x25   :  { %25 = dma.hbm_to_vmem [thread:$0]  %s523_s0, 128, %s23_s17, [#allocation4]  }
  0x26   :  { %s389_s8 = scalar_lea.hbm %s526_s3, 256 }
  0x27   :  { %p390_p2 = scmp.ne.s32.totalorder %s526_s3, %s389_s8  ;;  %p393_p3 = scmp.lt.u32.totalorder %s389_s8, %s526_s3 }
  0x29   :  { %p395_p4 = pnand %p393_p3, %p390_p2 }
  0x2b   :  { %398 = shalt.err (!%p395_p4)
}
  0x2c   :  { %s399_s14 = scalar_lea.vmem %s46_s19, 256  ;;  %p404_p6 = scmp.lt.s32.totalorder %s46_s19, %s46_s19 }
  0x2d   :  { %p400_p5 = scmp.ne.s32.totalorder %s46_s19, %s399_s14  ;;  %p405_p7 = scmp.lt.s32.totalorder %s399_s14, %s399_s14 }
  0x2f   :  { %p406_p8 = por %p405_p7, %p404_p6 }
  0x31   :  { %p407_p9 = pnand %p406_p8, %p400_p5 }
  0x33   :  { %410 = shalt.err (!%p407_p9)
}
  0x34   :  { %51 = dma.hbm_to_vmem [thread:$0]  %s526_s3, 256, %s46_s19, [#allocation6], %s416_s12, %s416_s12, %s417_s13  }
  0x35   :  { %411 = dma.done.wait [#allocation4], 128  }
  0x36   :  { %412 = vsyncadd [#allocation4], 4294967168 }
  0x37   :  { %413 = dma.done.wait [#allocation6], 384  }
  0x38   :  { %414 = vsyncadd [#allocation6], 4294966912  ;;  %v420_v1 = vmov 0.0   ;;  %vm421_vm0 = vmmov 0   ;;  %v338_v2 = vld [vmem:[#allocation5] sm:$0xff]   ;;  %v68_v3 = vld [vmem:[#allocation3] sm:$0xff]  ;;  %v206_v25 = vlaneseq }
  0x39   :  { %310 = vmatprep.subr.bf16.mxu0 %v420_v1  ;;  %312 = vmatprep.mubr.msk.bf16.mxu0 %vm421_vm0, %v420_v1  ;;  %vm85_vm1 = vcmask 130048   ;;  %v69_v4 = vpack.c.bf16 %v68_v3, %v68_v3  ;;  %v339_v5 = vld [vmem:[#allocation7] sm:$0xff]   ;;  %v340_v6 = vld [vmem:[#allocation7 + $0x8] sm:$0xff]   ;;  %vm154_vm2 = vcmask 261120   ;;  %v422_v16 = vmov 0  }
  0x3a   :  { %316 = vmatprep.subr.bf16.mxu1 %v420_v1  ;;  %320 = vmatprep.mubr.msk.bf16.mxu1 %vm421_vm0, %v420_v1  ;;  %v294_v7 = vld [vmem:[%s525_s2] ss:$0 sm:$0xff]  ;;  %v207_v26 = vshrl.u32 %v206_v25, 7  ;;  %vm286_vm3 = vcmask 57344  }
  0x3b   :  { %311 = vmatpush3.bf16.msra.mxu0 %v338_v2  ;;  %317 = vmatpush3.bf16.msra.mxu1 %v339_v5  ;;  %v200_v15 = vld [vmem:[#allocation2] sm:$0x1] }
  0x3c   :  { %324 = vmatprep.subr.mxu0 %v420_v1  ;;  %318 = vmatprep.subr.bf16.mxu1 %v420_v1  ;;  %v297_v17 = vld [vmem:[%s527_s4] ss:$0 sm:$0xff]  ;;  %v208_v27 = vsub.s32 0, %v207_v26 }
  0x3d   :  { %337 = vset.pattern.permute.xlu0 %v422_v16  ;;  %v199_v24 = vld [vmem:[%s528_s5] sm:$0x1] }
  0x3e   :  { %313 = vmatmul.mubr.msk.bf16.vlgmr.msra.gmra.mrb[0].mxu0 %vm85_vm1, %v69_v4  ;;  %203 = vperm.xlu0 %337, %v200_v15  }
  0x3f   :  { %326 = vmatprep.mubr.msk.f32.mxu0 %vm421_vm0, %v420_v1  ;;  %319 = vmatpush3.bf16.msra.mxu1 %v340_v6 }
  0xbd   :  { %v204_v28 = vpop.permute.xlu0 %203 }
  0xbe   :  { %v209_v29 = vrot.slane %v204_v28, %v208_v27 }
 0x111   :  { %v123_v8 = vpop.f32.mrb[0].mxu0 }
 0x112   :  { %v124_v9 = vadd.f32 %v294_v7, %v123_v8  ;;  %v314_v10 = vpop.f32.mrb[1].mxu0 }
 0x113   :  { %v126_v11 = vpop.f32.mrb[2].mxu0 }
 0x114   :  { %341 = vtanh.f32 %v124_v9  ;;  %v315_v12 = vpop.f32.mrb[3].mxu0 }
 0x11e   :  { %v342_v13 = vpop.eup %341 }
 0x11f   :  { %v130_v14 = vpack.c.bf16 %v342_v13, %v342_v13 }
 0x121   :  { %321 = vmatmul.mubr.msk.bf16.vlgmr.msra.gmra.mrb[0].mxu1 %vm154_vm2, %v130_v14 }
 0x1f4   :  { %v192_v18 = vpop.f32.mrb[0].mxu1 }
 0x1f5   :  { %v193_v19 = vadd.f32 %v297_v17, %v192_v18  ;;  %v322_v20 = vpop.f32.mrb[1].mxu1 }
 0x1f6   :  { %v195_v21 = vpop.f32.mrb[2].mxu1 }
 0x1f7   :  { %343 = vtanh.f32 %v193_v19  ;;  %v323_v22 = vpop.f32.mrb[3].mxu1 }
 0x201   :  { %v344_v23 = vpop.eup %343 }
 0x202   :  { %325 = vmatpush3.xpose.msk.msra.mxu0 %vm154_vm2, %v344_v23 }
 0x205   :  { %327 = vmatmul.mubr.msk.f32.vlgmr.msra.gmra.mrb[4].mxu0 %vm154_vm2, %v199_v24 }
 0x2d8   :  { %v282_v30 = vpop.f32.mrb[4].mxu0 }
 0x2d9   :  { %v283_v31 = vadd.f32 %v282_v30, %v209_v29  ;;  %v328_v32 = vpop.f32.mrb[5].mxu0 }
 0x2db   :  { %287 = vst.msk [vmem:[%s530_s7] sm:$0x1] %vm286_vm3, %v283_v31 }
 0x2dc   :  { %292 = vsyncpa [#allocation4], 1 }
 0x2dd   :  { %293 = vsyncpa [#allocation6], 1 }

</bundles_post_ra>
